<compile_context>
chip_gen: v6e
topology: v6e:2x2x1
jax: 0.10.0
libtpu: 0.0.40
codegen_flags: <defaults>
</compile_context>

<pallas_src>
import math
import functools

import jax
import jax.numpy as jnp
from jax.experimental import pallas as pl
from jax.experimental.pallas import tpu as pltpu


_ACTIVATIONS = {
    "relu": lambda v: jnp.maximum(v, 0.0),
    "elu": lambda v: jnp.where(v > 0, v, jnp.exp(v) - 1.0),        # torch ELU, alpha=1
    "leaky_relu": lambda v: jnp.where(v > 0, v, 0.01 * v),         # torch default slope
    "sigmoid": lambda v: 1.0 / (1.0 + jnp.exp(-v)),
    "tanh": jnp.tanh,
}


def _make_mlp_kernel(num_layers, activation, activate_last, compute_dtype):
    act = _ACTIVATIONS[activation]

    def kernel(*refs):
        # refs = (x_ref, w0, b0, w1, b1, ..., w_{L-1}, b_{L-1}, o_ref); batch-major.
        x_ref = refs[0]
        o_ref = refs[-1]
        params = refs[1:-1]

        # In-VMEM cast to the MXU streaming dtype (no extra HBM pass over x).
        h = x_ref[...].astype(compute_dtype)                   # (TB, num_input)
        for i in range(num_layers):
            w = params[2 * i][...]                              # (in, out), compute_dtype
            b = params[2 * i + 1][...]                          # (1, out), f32
            # MXU: (TB, in) @ (in, out) -> (TB, out), f32 accumulation.
            acc = jnp.dot(h, w, preferred_element_type=jnp.float32) + b
            if i < num_layers - 1 or activate_last:
                acc = act(acc)                                  # activation on f32 acc
            h = acc.astype(compute_dtype) if i < num_layers - 1 else acc
        o_ref[...] = h.astype(o_ref.dtype)

    return kernel


def mlp_forward(x, weights, biases, activation="relu", activate_last=False,
                compute_dtype=None, batch_tile=1024):
    """Fused MLP forward as a single batch-tiled Pallas kernel.

    x:       (batch, num_input)  -- torch.nn.Linear convention, used as-is (no transpose).
    weights: list of (out, in) arrays (PyTorch layout).
    biases:  list of (out,) arrays.
    compute_dtype: dtype streamed into the MXU (accumulation is always f32).
        Defaults to bfloat16 when x is float32 (native fast path on v5e/v6e/v7x).
    """
    num_layers = len(weights)
    batch, num_input = x.shape
    num_out = int(weights[-1].shape[0])

    if compute_dtype is None:
        compute_dtype = jnp.bfloat16 if x.dtype == jnp.dtype(jnp.float32) else x.dtype
    compute_dtype = jnp.dtype(compute_dtype)

    # One-time wrapper plumbing on the (small) parameters only:
    #   weights -> (in, out) in compute_dtype, biases -> (1, out) in f32.
    flat_params = []
    for w, b in zip(weights, biases):
        flat_params.append(jnp.asarray(w, compute_dtype).T)
        flat_params.append(jnp.asarray(b, jnp.float32).reshape(1, -1))

    # Batch tile (sublane dim). Big tiles amortize per-grid-step overhead (~0.35us);
    # multiple of 256 is MXU-friendly on v6e/v7x and 128-aligned for v5e.
    assert batch_tile % 256 == 0, "batch_tile must be a multiple of 256"
    if batch > batch_tile:
        tb = batch_tile
    elif batch >= 256 and batch % 16 == 0:
        tb = batch // 2     # >= 2 grid steps so both v7x TensorCores get work
    else:
        tb = batch          # full-dim block (allowed for any size)

    n_tiles = pl.cdiv(batch, tb)
    padded_batch = n_tiles * tb
    x_in = x
    if padded_batch != batch:
        # Pad the ragged last tile so every block is full (only costs an extra
        # small copy when batch % tb != 0).
        x_in = jnp.pad(x, ((0, padded_batch - batch), (0, 0)))
    grid = (n_tiles,)

    # VMEM budget from actual buffer sizes (x/out tiles and resident params are
    # double-buffered by the pipeline) + generous f32 working set, with headroom.
    itemsize = x.dtype.itemsize
    x_tile_bytes = tb * num_input * itemsize
    out_tile_bytes = tb * num_out * itemsize
    param_bytes = sum(int(p.size) * p.dtype.itemsize for p in flat_params)
    max_feat = max([num_input, num_out] + [int(w.shape[0]) for w in weights])
    work_bytes = 4 * tb * max_feat * 4
    needed = 2 * (x_tile_bytes + out_tile_bytes + param_bytes) + work_bytes
    vmem_limit = int(min(max(needed + (4 << 20), 32 << 20), 100 << 20))

    # Advisory cost estimate for XLA's scheduler.
    flops = 2 * batch * sum(int(w.shape[0]) * int(w.shape[1]) for w in weights)
    if activation in ("elu", "sigmoid", "tanh"):
        act_dims = [int(w.shape[0]) for w in weights[:-1]]
        if activate_last:
            act_dims.append(num_out)
        transcendentals = batch * sum(act_dims)
    else:
        transcendentals = 0
    bytes_accessed = (batch * num_input * itemsize + param_bytes
                      + batch * num_out * itemsize)

    kernel = _make_mlp_kernel(num_layers, activation, activate_last, compute_dtype)

    x_spec = pl.BlockSpec((tb, num_input), lambda i: (i, 0))
    out_spec = pl.BlockSpec((tb, num_out), lambda i: (i, 0))
    # Weights/biases: full-array blocks with constant index_map -> VMEM-resident
    # across grid steps (no re-DMA after the first step).
    param_specs = [pl.BlockSpec(p.shape, lambda i: (0, 0)) for p in flat_params]

    out = pl.pallas_call(
        kernel,
        out_shape=jax.ShapeDtypeStruct((padded_batch, num_out), x.dtype),
        grid=grid,
        in_specs=[x_spec] + param_specs,
        out_specs=out_spec,
        compiler_params=pltpu.CompilerParams(
            dimension_semantics=("parallel",),
            vmem_limit_bytes=vmem_limit,
        ),
        cost_estimate=pl.CostEstimate(
            flops=flops,
            transcendentals=transcendentals,
            bytes_accessed=bytes_accessed,
        ),
    )(x_in, *flat_params)

    if padded_batch != batch:
        out = out[:batch]
    return out


def init_mlp_params(key, num_layers, num_input, num_hidden, num_out):
    """Deterministic init matching torch.nn.Linear default (uniform +-1/sqrt(fan_in))."""
    if num_layers == 1:
        dims = [(num_input, num_out)]
    else:
        dims = [(num_input, num_hidden)]
        dims += [(num_hidden, num_hidden)] * (num_layers - 2)
        dims += [(num_hidden, num_out)]

    weights, biases = [], []
    for (fan_in, fan_out) in dims:
        key, kw, kb = jax.random.split(key, 3)
        bound = 1.0 / math.sqrt(fan_in)
        weights.append(jax.random.uniform(kw, (fan_out, fan_in), jnp.float32, -bound, bound))
        biases.append(jax.random.uniform(kb, (fan_out,), jnp.float32, -bound, bound))
    return weights, biases


def mlp_reference(x, weights, biases, activation="relu", activate_last=False):
    act = _ACTIVATIONS[activation]
    h = x.astype(jnp.float32)
    n = len(weights)
    for i, (w, b) in enumerate(zip(weights, biases)):
        h = h @ w.T + b
        if i < n - 1 or activate_last:
            h = act(h)
    return h.astype(x.dtype)


if __name__ == "__main__":
    num_layers, num_input, num_hidden, num_out = 3, 32, 64, 16

    key = jax.random.PRNGKey(0)
    key, kp = jax.random.split(key)
    weights, biases = init_mlp_params(kp, num_layers, num_input, num_hidden, num_out)

    # --- Test 1: tiny batch, f32 end-to-end (single full-dim block) ---
    batch = 8
    key, kx = jax.random.split(key)
    x = jax.random.normal(kx, (batch, num_input), jnp.float32)
    run_f32 = jax.jit(functools.partial(mlp_forward, activation="relu",
                                        activate_last=False,
                                        compute_dtype=jnp.float32))
    out = jax.block_until_ready(run_f32(x, weights, biases))
    ref = mlp_reference(x, weights, biases, activation="relu", activate_last=False)
    assert out.shape == (batch, num_out)
    assert jnp.allclose(out, ref, atol=1e-5, rtol=1e-5), "Pallas MLP (f32) mismatch vs reference"

    # --- Test 2: batch=512 exercising the grid (2 tiles of 256) with the default
    #             bf16-streaming / f32-accumulation path ---
    batch2 = 512
    key, kx2 = jax.random.split(key)
    x2 = jax.random.normal(kx2, (batch2, num_input), jnp.float32)
    run_bf16 = jax.jit(functools.partial(mlp_forward, activation="relu",
                                         activate_last=False))
    out2 = jax.block_until_ready(run_bf16(x2, weights, biases))
    ref2 = mlp_reference(x2, weights, biases, activation="relu", activate_last=False)
    assert out2.shape == (batch2, num_out)
    assert jnp.allclose(out2, ref2, atol=5e-2, rtol=5e-2), "Pallas MLP (bf16) mismatch vs reference"

    # --- Test 3: ragged batch (pads to full tiles), tanh + activate_last, f32 ---
    batch3 = 1100
    key, kx3 = jax.random.split(key)
    x3 = jax.random.normal(kx3, (batch3, num_input), jnp.float32)
    run_tanh = jax.jit(functools.partial(mlp_forward, activation="tanh",
                                         activate_last=True,
                                         compute_dtype=jnp.float32))
    out3 = jax.block_until_ready(run_tanh(x3, weights, biases))
    ref3 = mlp_reference(x3, weights, biases, activation="tanh", activate_last=True)
    assert out3.shape == (batch3, num_out)
    assert jnp.allclose(out3, ref3, atol=1e-4, rtol=1e-4), "Pallas MLP (ragged/tanh) mismatch vs reference"

    print("KERNEL_OK")
</pallas_src>

<mosaic_0001>
module attributes {stable_mosaic.version = 11 : i64} {
  func.func @kernel(%arg0: i32, %arg1: memref<8x32xf32, #tpu.memory_space<vmem>>, %arg2: memref<32x64xf32, #tpu.memory_space<vmem>>, %arg3: memref<1x64xf32, #tpu.memory_space<vmem>>, %arg4: memref<64x64xf32, #tpu.memory_space<vmem>>, %arg5: memref<1x64xf32, #tpu.memory_space<vmem>>, %arg6: memref<64x16xf32, #tpu.memory_space<vmem>>, %arg7: memref<1x16xf32, #tpu.memory_space<vmem>>, %arg8: memref<8x16xf32, #tpu.memory_space<vmem>>) attributes {dimension_semantics = [#tpu.dimension_semantics<parallel>], iteration_bounds = array<i64: 1>, scalar_prefetch = 0 : i64, scratch_operands = 0 : i64, tpu.core_type = #tpu.core_type<tc>, window_params = [{transform_indices = @transform_0, window_bounds = array<i64: 8, 32>}, {pipeline_mode = #tpu.pipeline_mode<synchronous>, transform_indices = @transform_1, window_bounds = array<i64: 32, 64>}, {pipeline_mode = #tpu.pipeline_mode<synchronous>, transform_indices = @transform_2, window_bounds = array<i64: 1, 64>}, {pipeline_mode = #tpu.pipeline_mode<synchronous>, transform_indices = @transform_3, window_bounds = array<i64: 64, 64>}, {pipeline_mode = #tpu.pipeline_mode<synchronous>, transform_indices = @transform_4, window_bounds = array<i64: 1, 64>}, {pipeline_mode = #tpu.pipeline_mode<synchronous>, transform_indices = @transform_5, window_bounds = array<i64: 64, 16>}, {pipeline_mode = #tpu.pipeline_mode<synchronous>, transform_indices = @transform_6, window_bounds = array<i64: 1, 16>}, {transform_indices = @transform_7, window_bounds = array<i64: 8, 16>}]} {
    %c0 = arith.constant 0 : index
    %c0_0 = arith.constant 0 : index
    %0 = vector.load %arg1[%c0, %c0_0] : memref<8x32xf32, #tpu.memory_space<vmem>>, vector<8x32xf32>
    %c0_1 = arith.constant 0 : index
    %c0_2 = arith.constant 0 : index
    %1 = vector.load %arg2[%c0_1, %c0_2] : memref<32x64xf32, #tpu.memory_space<vmem>>, vector<32x64xf32>
    %c0_3 = arith.constant 0 : index
    %c0_4 = arith.constant 0 : index
    %2 = vector.load %arg3[%c0_3, %c0_4] : memref<1x64xf32, #tpu.memory_space<vmem>>, vector<1x64xf32>
    %cst = arith.constant dense<0.000000e+00> : vector<8x64xf32>
    %3 = tpu.matmul %0, %1, %cst {dimension_numbers = #tpu.dot_dimension_numbers<[1], [0], [0], [1], [0, 0, 1, 1], [], []>} : vector<8x32xf32>, vector<32x64xf32>, vector<8x64xf32> -> vector<8x64xf32>
    %4 = vector.broadcast %2 : vector<1x64xf32> to vector<8x64xf32>
    %5 = arith.addf %3, %4 : vector<8x64xf32>
    %cst_5 = arith.constant 0.000000e+00 : f32
    %6 = vector.broadcast %cst_5 : f32 to vector<8x64xf32>
    %7 = arith.maximumf %5, %6 : vector<8x64xf32>
    %c0_6 = arith.constant 0 : index
    %c0_7 = arith.constant 0 : index
    %8 = vector.load %arg4[%c0_6, %c0_7] : memref<64x64xf32, #tpu.memory_space<vmem>>, vector<64x64xf32>
    %c0_8 = arith.constant 0 : index
    %c0_9 = arith.constant 0 : index
    %9 = vector.load %arg5[%c0_8, %c0_9] : memref<1x64xf32, #tpu.memory_space<vmem>>, vector<1x64xf32>
    %cst_10 = arith.constant dense<0.000000e+00> : vector<8x64xf32>
    %10 = tpu.matmul %7, %8, %cst_10 {dimension_numbers = #tpu.dot_dimension_numbers<[1], [0], [0], [1], [0, 0, 1, 1], [], []>} : vector<8x64xf32>, vector<64x64xf32>, vector<8x64xf32> -> vector<8x64xf32>
    %11 = vector.broadcast %9 : vector<1x64xf32> to vector<8x64xf32>
    %12 = arith.addf %10, %11 : vector<8x64xf32>
    %cst_11 = arith.constant 0.000000e+00 : f32
    %13 = vector.broadcast %cst_11 : f32 to vector<8x64xf32>
    %14 = arith.maximumf %12, %13 : vector<8x64xf32>
    %c0_12 = arith.constant 0 : index
    %c0_13 = arith.constant 0 : index
    %15 = vector.load %arg6[%c0_12, %c0_13] : memref<64x16xf32, #tpu.memory_space<vmem>>, vector<64x16xf32>
    %c0_14 = arith.constant 0 : index
    %c0_15 = arith.constant 0 : index
    %16 = vector.load %arg7[%c0_14, %c0_15] : memref<1x16xf32, #tpu.memory_space<vmem>>, vector<1x16xf32>
    %cst_16 = arith.constant dense<0.000000e+00> : vector<8x16xf32>
    %17 = tpu.matmul %14, %15, %cst_16 {dimension_numbers = #tpu.dot_dimension_numbers<[1], [0], [0], [1], [0, 0, 1, 1], [], []>} : vector<8x64xf32>, vector<64x16xf32>, vector<8x16xf32> -> vector<8x16xf32>
    %18 = vector.broadcast %16 : vector<1x16xf32> to vector<8x16xf32>
    %19 = arith.addf %17, %18 : vector<8x16xf32>
    %c0_17 = arith.constant 0 : index
    %c0_18 = arith.constant 0 : index
    %20 = vector.load %arg8[%c0_17, %c0_18] : memref<8x16xf32, #tpu.memory_space<vmem>>, vector<8x16xf32>
    tpu.vector_store %arg8[%c0_17, %c0_18], %19 {strides = array<i32>} : memref<8x16xf32, #tpu.memory_space<vmem>>, vector<8x16xf32>,
    return
  }
  func.func @transform_0(%arg0: i32) -> (i32, i32) {
    %c0_i32 = arith.constant 0 : i32
    %c0_i32_0 = arith.constant 0 : i32
    return %arg0, %c0_i32 : i32, i32
  }
  func.func @transform_1(%arg0: i32) -> (i32, i32) {
    %c0_i32 = arith.constant 0 : i32
    %c0_i32_0 = arith.constant 0 : i32
    %c0_i32_1 = arith.constant 0 : i32
    return %c0_i32, %c0_i32_0 : i32, i32
  }
  func.func @transform_2(%arg0: i32) -> (i32, i32) {
    %c0_i32 = arith.constant 0 : i32
    %c0_i32_0 = arith.constant 0 : i32
    %c0_i32_1 = arith.constant 0 : i32
    return %c0_i32, %c0_i32_0 : i32, i32
  }
  func.func @transform_3(%arg0: i32) -> (i32, i32) {
    %c0_i32 = arith.constant 0 : i32
    %c0_i32_0 = arith.constant 0 : i32
    %c0_i32_1 = arith.constant 0 : i32
    return %c0_i32, %c0_i32_0 : i32, i32
  }
  func.func @transform_4(%arg0: i32) -> (i32, i32) {
    %c0_i32 = arith.constant 0 : i32
    %c0_i32_0 = arith.constant 0 : i32
    %c0_i32_1 = arith.constant 0 : i32
    return %c0_i32, %c0_i32_0 : i32, i32
  }
  func.func @transform_5(%arg0: i32) -> (i32, i32) {
    %c0_i32 = arith.constant 0 : i32
    %c0_i32_0 = arith.constant 0 : i32
    %c0_i32_1 = arith.constant 0 : i32
    return %c0_i32, %c0_i32_0 : i32, i32
  }
  func.func @transform_6(%arg0: i32) -> (i32, i32) {
    %c0_i32 = arith.constant 0 : i32
    %c0_i32_0 = arith.constant 0 : i32
    %c0_i32_1 = arith.constant 0 : i32
    return %c0_i32, %c0_i32_0 : i32, i32
  }
  func.func @transform_7(%arg0: i32) -> (i32, i32) {
    %c0_i32 = arith.constant 0 : i32
    %c0_i32_0 = arith.constant 0 : i32
    return %arg0, %c0_i32 : i32, i32
  }
}

</mosaic_0001>

<bundles_post_ra>
// kernel: mlp_forward.1
= control target key start
LH: loop header
LB: loop body
LE: loop exit
PB: predicated region body
PF: predicated region fallthrough
CT: control target
= control target key end

     0   :  { %v411_v1 = vmov 0.0   ;;  %vm412_vm0 = vmmov 0   ;;  %s557_s0 = inlined_call_operand.vmem [shape: f32[8,32], index: 0, kind: input, shape index: {}]   ;;  %s558_s1 = inlined_call_operand.vmem [shape: f32[32,64], index: 1, kind: input, shape index: {}]   ;;  %s559_s2 = inlined_call_operand.vmem [shape: f32[1,64], index: 2, kind: input, shape index: {}]   ;;  %s560_s3 = inlined_call_operand.vmem [shape: f32[64,64], index: 3, kind: input, shape index: {}]   ;;  %s561_s4 = inlined_call_operand.vmem [shape: f32[1,64], index: 4, kind: input, shape index: {}]   ;;  %s562_s5 = inlined_call_operand.vmem [shape: f32[64,16], index: 5, kind: input, shape index: {}]   ;;  %s563_s6 = inlined_call_operand.vmem [shape: f32[1,16], index: 6, kind: input, shape index: {}]   ;;  %s564_s7 = inlined_call_operand.hbm [shape: f32[8,16], index: 7, kind: output, shape index: {}]  }
   0x1   :  { %v31_v0 = vld [vmem:[%s558_s1 + $0x18] sm:$0xff]  ;;  %337 = vmatprep.subr.mxu0 %v411_v1  ;;  %v30_v2 = vld [vmem:[%s558_s1 + $0x10] sm:$0xff]  ;;  %345 = vmatprep.mubr.msk.f32.mxu0 %vm412_vm0, %v411_v1  ;;  %v29_v5 = vld [vmem:[%s558_s1 + $0x8] sm:$0xff] }
   0x2   :  { %v121_v3 = vld [vmem:[%s560_s3 + $0x38] sm:$0xff]  ;;  %338 = vmatpush3.msra.mxu0 %v31_v0  ;;  %348 = vmatprep.subr.mxu1 %v411_v1  ;;  %v120_v4 = vld [vmem:[%s560_s3 + $0x30] sm:$0xff] }
   0x3   :  { %339 = vmatprep.subr.mxu0 %v411_v1  ;;  %349 = vmatpush3.msra.mxu1 %v121_v3 }
   0x4   :  { %12 = vsyncpa [#allocation3], 0  ;;  %340 = vmatpush3.msra.mxu0 %v30_v2  ;;  %350 = vmatprep.subr.mxu1 %v411_v1  ;;  %v119_v6 = vld [vmem:[%s560_s3 + $0x28] sm:$0xff]  ;;  %v28_v7 = vld [vmem:[%s558_s1] sm:$0xff]  ;;  %vm39_vm1 = vcmask 261120   ;;  %vm129_vm2 = vcmask 523264  }
   0x5   :  { %341 = vmatprep.subr.mxu0 %v411_v1  ;;  %351 = vmatpush3.msra.mxu1 %v120_v4  ;;  %v27_v8 = vld [vmem:[%s557_s0] sm:$0xff]  ;;  %v117_v10 = vld [vmem:[%s560_s3 + $0x18] sm:$0xff]  ;;  %v116_v11 = vld [vmem:[%s560_s3 + $0x10] sm:$0xff]  ;;  %s413_s20 = smov [#allocation2]   ;;  %vm292_vm3 = vcmask 130048  }
   0x6   :  { %342 = vmatpush3.msra.mxu0 %v29_v5  ;;  %352 = vmatprep.subr.mxu1 %v411_v1  ;;  %v118_v9 = vld [vmem:[%s560_s3 + $0x20] sm:$0xff]  ;;  %v115_v12 = vld [vmem:[%s560_s3 + $0x8] sm:$0xff]  ;;  %v211_v14 = vld [vmem:[%s562_s5 + $0x38] sm:$0xff]  ;;  %s300_s21 = sshll.u32 %s413_s20, 4  ;;  %s301_s21 = int_to_ptr.vmem [resolvable:$true] %s300_s21 }
   0x7   :  { %343 = vmatprep.subr.mxu0 %v411_v1  ;;  %353 = vmatpush3.msra.mxu1 %v119_v6  ;;  %v114_v13 = vld [vmem:[%s560_s3] sm:$0xff]  ;;  %v210_v15 = vld [vmem:[%s562_s5 + $0x30] sm:$0xff]  ;;  %v209_v16 = vld [vmem:[%s562_s5 + $0x28] sm:$0xff]  ;;  %p394_p1 = scmp.lt.s32.totalorder %s301_s21, %s301_s21 }
   0x8   :  { %344 = vmatpush3.msra.mxu0 %v28_v7  ;;  %354 = vmatprep.subr.mxu1 %v411_v1  ;;  %v208_v17 = vld [vmem:[%s562_s5 + $0x20] sm:$0xff]  ;;  %v207_v18 = vld [vmem:[%s562_s5 + $0x18] sm:$0xff]  ;;  %v206_v24 = vld [vmem:[%s562_s5 + $0x10] sm:$0xff] }
   0x9   :  { %346 = vmatmul.mubr.msk.f32.vlgmr.msra.gmra.mxu0 %vm39_vm1, %v27_v8  ;;  %355 = vmatpush3.msra.mxu1 %v118_v9  ;;  %v308_v19 = vld [vmem:[%s559_s2] ss:$0 sm:$0xff]  ;;  %v205_v25 = vld [vmem:[%s562_s5 + $0x8] sm:$0xff] }
   0xa   :  { %356 = vmatprep.subr.mxu1 %v411_v1  ;;  %364 = vmatprep.mubr.msk.f32.mxu1 %vm412_vm0, %v411_v1  ;;  %v204_v26 = vld [vmem:[%s562_s5] sm:$0xff]  ;;  %s389_s5 = scalar_lea.vmem %s301_s21, 128 }
   0xb   :  { %357 = vmatpush3.msra.mxu1 %v117_v10  ;;  %367 = vmatprep.subr.mxu0 %v411_v1  ;;  %v310_v27 = vld [vmem:[%s561_s4] ss:$0 sm:$0xff]  ;;  %p390_p0 = scmp.ne.s32.totalorder %s301_s21, %s389_s5  ;;  %p395_p2 = scmp.lt.s32.totalorder %s389_s5, %s389_s5 }
   0xc   :  { %358 = vmatprep.subr.mxu1 %v411_v1  ;;  %383 = vmatprep.mubr.msk.f32.mxu0 %vm412_vm0, %v411_v1  ;;  %v312_v32 = vld [vmem:[%s563_s6] ss:$0 sm:$0xff] }
   0xd   :  { %359 = vmatpush3.msra.mxu1 %v116_v11  ;;  %368 = vmatpush3.msra.mxu0 %v211_v14  ;;  %p396_p3 = por %p395_p2, %p394_p1 }
   0xe   :  { %360 = vmatprep.subr.mxu1 %v411_v1  ;;  %369 = vmatprep.subr.mxu0 %v411_v1 }
   0xf   :  { %361 = vmatpush3.msra.mxu1 %v115_v12  ;;  %370 = vmatpush3.msra.mxu0 %v210_v15  ;;  %p397_p4 = pnand %p396_p3, %p390_p0 }
  0x10   :  { %362 = vmatprep.subr.mxu1 %v411_v1  ;;  %371 = vmatprep.subr.mxu0 %v411_v1 }
  0x11   :  { %363 = vmatpush3.msra.mxu1 %v114_v13  ;;  %372 = vmatpush3.msra.mxu0 %v209_v16 }
  0x12   :  { %373 = vmatprep.subr.mxu0 %v411_v1 }
  0x13   :  { %374 = vmatpush3.msra.mxu0 %v208_v17 }
  0x14   :  { %375 = vmatprep.subr.mxu0 %v411_v1 }
  0x15   :  { %376 = vmatpush3.msra.mxu0 %v207_v18 }
  0x16   :  { %377 = vmatprep.subr.mxu0 %v411_v1 }
  0x17   :  { %378 = vmatpush3.msra.mxu0 %v206_v24 }
  0x18   :  { %379 = vmatprep.subr.mxu0 %v411_v1 }
  0x19   :  { %380 = vmatpush3.msra.mxu0 %v205_v25 }
  0x1a   :  { %381 = vmatprep.subr.mxu0 %v411_v1 }
  0x1b   :  { %382 = vmatpush3.msra.mxu0 %v204_v26 }
  0xc9   :  { %v109_v20 = vpop.f32.mrf.mxu0 }
  0xca   :  { %v110_v21 = vadd.f32 %v308_v19, %v109_v20 }
  0xcb   :  { %v347_v22 = vpop.f32.mrf.mxu0 }
  0xcc   :  { %v113_v23 = vmax.f32 %v110_v21, 0.0 }
  0xce   :  { %365 = vmatmul.mubr.msk.f32.vlgmr.msra.gmra.mxu1 %vm129_vm2, %v113_v23 }
 0x18e   :  { %v199_v28 = vpop.f32.mrf.mxu1 }
 0x18f   :  { %v200_v29 = vadd.f32 %v310_v27, %v199_v28 }
 0x190   :  { %v366_v30 = vpop.f32.mrf.mxu1 }
 0x191   :  { %v203_v31 = vmax.f32 %v200_v29, 0.0 }
 0x193   :  { %384 = vmatmul.mubr.msk.f32.vlgmr.msra.gmra.mxu0 %vm129_vm2, %v203_v31 }
 0x253   :  { %v288_v33 = vpop.f32.mrf.mxu0 }
 0x254   :  { %v289_v34 = vadd.f32 %v312_v32, %v288_v33 }
 0x255   :  { %v385_v35 = vpop.f32.mrf.mxu0 }
 0x256   :  { %293 = vst.msk [vmem:[#allocation2] sm:$0xff] %vm292_vm3, %v289_v34 }
 0x257   :  { %400 = shalt.err (!%p397_p4)
}
 0x258   :  { %303 = dma.vmem_to_hbm [thread:$0]  %s301_s21, 128, %s564_s7, [#allocation3]  }
 0x259   :  { %409 = dma.done.wait [#allocation3], 128  }
 0x25a   :  { %410 = vsyncadd [#allocation3], 4294967168 }
 0x25b   :  { %307 = vsyncpa [#allocation3], 1 }

</bundles_post_ra>
